<compile_context>
chip_gen: v7x
topology: tpu7x:2x2x1
jax: 0.10.0
libtpu: 0.0.40
codegen_flags: <defaults>
</compile_context>

<pallas_src>
import functools

import jax
import jax.numpy as jnp
from jax import lax
from jax.experimental import pallas as pl
from jax.experimental.pallas import tpu as pltpu


def _focal_loss_kernel(logits_ref, target_ref, alpha_ref, out_ref, *,
                       gamma, n_valid, tile_n):
    """One batch tile: logits (C, TILE_N), target (1, TILE_N), alpha (C, 1).

    Writes a lane-dense (1, 1, 128) partial-sum row for this tile.
    """
    i = pl.program_id(0)

    x = logits_ref[...].astype(jnp.float32)            # (C, TILE_N)
    tgt = target_ref[...]                               # (1, TILE_N) int32
    alpha = alpha_ref[...]                               # (C, 1) f32 (pre-cast)
    c = x.shape[0]

    # Numerically stable log-softmax pieces along the class (sublane) axis.
    m = jnp.max(x, axis=0, keepdims=True)                # (1, TILE_N)
    z = x - m
    lse = jnp.log(jnp.sum(jnp.exp(z), axis=0, keepdims=True))   # (1, TILE_N)

    # One-hot select of the target class (no dynamic gather on TPU).  The full
    # log_softmax tensor is never materialized: logpt = z[target] - lse.
    cls_idx = lax.broadcasted_iota(jnp.int32, (c, tile_n), 0)
    onehot = cls_idx == tgt                               # (C, TILE_N)
    z_t = jnp.sum(jnp.where(onehot, z, 0.0), axis=0, keepdims=True)
    logpt = z_t - lse                                     # = -cross_entropy, <= 0
    pt = jnp.exp(logpt)                                   # <= 1

    # alpha[target] via the same one-hot mask; (C, 1) broadcasts in-vreg.
    alpha_t = jnp.sum(jnp.where(onehot, alpha, 0.0), axis=0, keepdims=True)

    # (1 - pt) ** gamma: strength-reduce to plain VPU multiplies for integer
    # gamma (common gamma=2 case) so the single EUP port only runs the exps.
    g = float(gamma)
    one_m_pt = 1.0 - pt                                   # >= 0 by construction
    if g.is_integer() and 0 <= g <= 8:
        ig = int(g)
        w = one_m_pt if ig > 0 else jnp.ones_like(one_m_pt)
        for _ in range(max(ig - 1, 0)):
            w = w * one_m_pt
    else:
        # generic path on the EUP; one_m_pt == 0 -> log = -inf -> w = 0
        w = jnp.exp(jnp.float32(g) * jnp.log(one_m_pt))

    focal = -(alpha_t * w) * logpt                        # (1, TILE_N)

    # Mask out batch-padding columns of the (possibly ragged) last tile.
    col = i * tile_n + lax.broadcasted_iota(jnp.int32, (1, tile_n), 1)
    focal = jnp.where(col < n_valid, focal, 0.0)

    # Fold TILE_N lanes down to a lane-dense 128-wide partial-sum row using
    # static, vreg-aligned slices (cheap; avoids a 1-lane masked store).
    psum = focal[:, 0:128]
    for k in range(1, tile_n // 128):
        psum = psum + focal[:, k * 128:(k + 1) * 128]
    out_ref[...] = psum.reshape(1, 1, 128)


def _pick_tile_n(n, c):
    """Batch-tile size (multiple of 128) with a small, generation-safe VMEM
    footprint: ~2 MiB per buffer, x2 for double buffering."""
    per_col = max(8, c) * 4 + 4      # logits column (f32-equiv, sublane-padded) + int32 target
    budget = 2 * 1024 * 1024
    tile = (budget // per_col) // 128 * 128
    tile = int(max(128, min(8192, tile)))
    n_pad128 = -(-n // 128) * 128
    return min(tile, n_pad128)


def focal_loss_v2(logits, target, alpha=None, gamma=2.0, tile_n=None):
    """Pallas implementation of FocalLoss_v2.forward; returns the scalar mean.

    logits: (N, C) float32 or bfloat16 (kept in its HBM dtype; upcast per-tile)
    target: (N,) integer class ids in [0, C)
    alpha : (C,) per-class weights; defaults to ones (like the PyTorch module)
    """
    n, c = logits.shape
    if alpha is None:
        alpha = jnp.ones((c,), dtype=jnp.float32)
    alpha2d = jnp.asarray(alpha, jnp.float32).reshape(c, 1)
    target_row = jnp.reshape(target, (1, -1)).astype(jnp.int32)

    # Lane-dense layout: classes on sublanes, batch on the 128-lane axis.
    # TODO(synk): add an [N, C]-blocked variant (class dim on lanes) to skip
    # this wrapper transpose when C >= 128.
    logits_t = logits.T                                   # (C, N) layout plumbing

    if tile_n is None:
        tile_n = _pick_tile_n(n, c)
    else:
        tile_n = max(128, (int(tile_n) // 128) * 128)
    num_blocks = pl.cdiv(n, tile_n)
    n_pad = num_blocks * tile_n
    if n_pad != n:
        logits_t = jnp.pad(logits_t, ((0, 0), (0, n_pad - n)))
        target_row = jnp.pad(target_row, ((0, 0), (0, n_pad - n)))

    kernel = functools.partial(_focal_loss_kernel, gamma=float(gamma),
                               n_valid=n, tile_n=tile_n)

    # One lane-dense partial-sum row per batch tile; no cross-iteration
    # accumulator, so the grid axis is truly parallel (both TCs on v7x).
    partials = pl.pallas_call(
        kernel,
        out_shape=jax.ShapeDtypeStruct((num_blocks, 1, 128), jnp.float32),
        grid=(num_blocks,),
        in_specs=[
            pl.BlockSpec((c, tile_n), lambda i: (0, i)),   # logits tile
            pl.BlockSpec((1, tile_n), lambda i: (0, i)),   # target tile
            pl.BlockSpec((c, 1), lambda i: (0, 0)),        # alpha (pinned)
        ],
        out_specs=pl.BlockSpec((1, 1, 128), lambda i: (i, 0, 0)),
        compiler_params=pltpu.CompilerParams(
            dimension_semantics=("parallel",)),
    )(logits_t, target_row, alpha2d)

    # Tiny final reduction + mean over the *global* N in plain JAX.
    return jnp.sum(partials) / jnp.float32(n)


def _reference(logits, target, alpha, gamma):
    # pure-JAX reference for sanity checking
    logits = logits.astype(jnp.float32)
    logz = jax.nn.log_softmax(logits, axis=-1)
    tgt = target.astype(jnp.int32)
    logpt = jnp.take_along_axis(logz, tgt[:, None], axis=-1)[:, 0]
    pt = jnp.exp(logpt)
    alpha = jnp.asarray(alpha, jnp.float32)
    alpha_t = alpha[tgt]
    focal = -(alpha_t * (1.0 - pt) ** gamma) * logpt
    return jnp.mean(focal)


if __name__ == "__main__":
    key = jax.random.PRNGKey(0)
    k1, k2, k3, k4 = jax.random.split(key, 4)

    # case 1: module defaults (num_class=2, gamma=2, alpha=None), f32 logits
    n1, c1 = 8, 2
    logits1 = jax.random.normal(k1, (n1, c1), dtype=jnp.float32)
    target1 = jax.random.randint(k2, (n1,), 0, c1, dtype=jnp.int32)
    loss1 = jax.block_until_ready(focal_loss_v2(logits1, target1, None, 2.0))
    ref1 = _reference(logits1, target1, jnp.ones((c1,), jnp.float32), 2.0)
    assert jnp.allclose(loss1, ref1, atol=1e-5, rtol=1e-4), (loss1, ref1)

    # case 2: bf16 logits, ragged multi-block grid (forced tile_n=128),
    #         per-class alpha, non-integer gamma
    n2, c2 = 300, 3
    logits2 = jax.random.normal(k3, (n2, c2), jnp.float32).astype(jnp.bfloat16)
    target2 = jax.random.randint(k4, (n2,), 0, c2, dtype=jnp.int32)
    alpha2 = jnp.array([0.25, 0.5, 1.0], dtype=jnp.float32)
    loss2 = jax.block_until_ready(
        focal_loss_v2(logits2, target2, alpha2, 1.5, tile_n=128))
    ref2 = _reference(logits2, target2, alpha2, 1.5)
    assert jnp.allclose(loss2, ref2, atol=1e-5, rtol=1e-3), (loss2, ref2)

    print("KERNEL_OK")
</pallas_src>

<mosaic_0001>
module attributes {stable_mosaic.version = 11 : i64} {
  func.func @_focal_loss_kernel(%arg0: i32, %arg1: memref<2x128xf32, #tpu.memory_space<vmem>>, %arg2: memref<1x128xi32, #tpu.memory_space<vmem>>, %arg3: memref<2x1xf32, #tpu.memory_space<vmem>>, %arg4: memref<1x1x128xf32, #tpu.memory_space<vmem>>) attributes {dimension_semantics = [#tpu.dimension_semantics<parallel>], iteration_bounds = array<i64: 1>, scalar_prefetch = 0 : i64, scratch_operands = 0 : i64, tpu.core_type = #tpu.core_type<tc>, window_params = [{transform_indices = @transform_0, window_bounds = array<i64: 2, 128>}, {transform_indices = @transform_1, window_bounds = array<i64: 1, 128>}, {pipeline_mode = #tpu.pipeline_mode<synchronous>, transform_indices = @transform_2, window_bounds = array<i64: 2, 1>}, {transform_indices = @transform_3, window_bounds = array<i64: 1, 1, 128>}]} {
    %c0 = arith.constant 0 : index
    %c0_0 = arith.constant 0 : index
    %0 = vector.load %arg1[%c0, %c0_0] : memref<2x128xf32, #tpu.memory_space<vmem>>, vector<2x128xf32>
    %c0_1 = arith.constant 0 : index
    %c0_2 = arith.constant 0 : index
    %1 = vector.load %arg2[%c0_1, %c0_2] : memref<1x128xi32, #tpu.memory_space<vmem>>, vector<1x128xi32>
    %c0_3 = arith.constant 0 : index
    %c0_4 = arith.constant 0 : index
    %2 = vector.load %arg3[%c0_3, %c0_4] : memref<2x1xf32, #tpu.memory_space<vmem>>, vector<2x1xf32>
    %cst = arith.constant dense<0xFF800000> : vector<128xf32>
    %3 = vector.multi_reduction <maximumf>, %0, %cst [0] : vector<2x128xf32> to vector<128xf32>
    %4 = vector.shape_cast %3 : vector<128xf32> to vector<1x128xf32>
    %5 = vector.broadcast %4 : vector<1x128xf32> to vector<2x128xf32>
    %6 = arith.subf %0, %5 : vector<2x128xf32>
    %7 = math.exp %6 : vector<2x128xf32>
    %cst_5 = arith.constant dense<0.000000e+00> : vector<128xf32>
    %8 = vector.multi_reduction <add>, %7, %cst_5 [0] : vector<2x128xf32> to vector<128xf32>
    %9 = vector.shape_cast %8 : vector<128xf32> to vector<1x128xf32>
    %10 = math.log %9 : vector<1x128xf32>
    %11 = tpu.iota {dimensions = array<i32: 0>} : vector<2x128xi32>
    %12 = vector.broadcast %1 : vector<1x128xi32> to vector<2x128xi32>
    %13 = arith.cmpi eq, %11, %12 : vector<2x128xi32>
    %cst_6 = arith.constant 0.000000e+00 : f32
    %14 = vector.broadcast %cst_6 : f32 to vector<2x128xf32>
    %15 = arith.select %13, %6, %14 : vector<2x128xi1>, vector<2x128xf32>
    %cst_7 = arith.constant dense<0.000000e+00> : vector<128xf32>
    %16 = vector.multi_reduction <add>, %15, %cst_7 [0] : vector<2x128xf32> to vector<128xf32>
    %17 = vector.shape_cast %16 : vector<128xf32> to vector<1x128xf32>
    %18 = arith.subf %17, %10 : vector<1x128xf32>
    %19 = math.exp %18 : vector<1x128xf32>
    %cst_8 = arith.constant 0.000000e+00 : f32
    %20 = vector.shape_cast %2 : vector<2x1xf32> to vector<2x1xf32>
    %21 = vector.broadcast %20 : vector<2x1xf32> to vector<2x128xf32>
    %22 = vector.broadcast %cst_8 : f32 to vector<2x128xf32>
    %23 = arith.select %13, %21, %22 : vector<2x128xi1>, vector<2x128xf32>
    %cst_9 = arith.constant dense<0.000000e+00> : vector<128xf32>
    %24 = vector.multi_reduction <add>, %23, %cst_9 [0] : vector<2x128xf32> to vector<128xf32>
    %25 = vector.shape_cast %24 : vector<128xf32> to vector<1x128xf32>
    %cst_10 = arith.constant 1.000000e+00 : f32
    %26 = vector.broadcast %cst_10 : f32 to vector<1x128xf32>
    %27 = arith.subf %26, %19 : vector<1x128xf32>
    %28 = arith.mulf %27, %27 : vector<1x128xf32>
    %29 = arith.mulf %25, %28 : vector<1x128xf32>
    %cst_11 = arith.constant 0.000000e+00 : f32
    %30 = vector.broadcast %cst_11 : f32 to vector<1x128xf32>
    %31 = arith.subf %30, %29 : vector<1x128xf32>
    %32 = arith.mulf %31, %18 : vector<1x128xf32>
    %c128_i32 = arith.constant 128 : i32
    %33 = arith.muli %arg0, %c128_i32 : i32
    %34 = tpu.iota {dimensions = array<i32: 1>} : vector<1x128xi32>
    %35 = vector.broadcast %33 : i32 to vector<1x128xi32>
    %36 = arith.addi %35, %34 : vector<1x128xi32>
    %c8_i32 = arith.constant 8 : i32
    %37 = vector.broadcast %c8_i32 : i32 to vector<1x128xi32>
    %38 = arith.cmpi slt, %36, %37 : vector<1x128xi32>
    %cst_12 = arith.constant 0.000000e+00 : f32
    %39 = vector.broadcast %cst_12 : f32 to vector<1x128xf32>
    %40 = arith.select %38, %32, %39 : vector<1x128xi1>, vector<1x128xf32>
    %41 = vector.shape_cast %40 : vector<1x128xf32> to vector<1x1x128xf32>
    %c0_13 = arith.constant 0 : index
    %c0_14 = arith.constant 0 : index
    %c0_15 = arith.constant 0 : index
    %42 = vector.load %arg4[%c0_13, %c0_14, %c0_15] : memref<1x1x128xf32, #tpu.memory_space<vmem>>, vector<1x1x128xf32>
    tpu.vector_store %arg4[%c0_13, %c0_14, %c0_15], %41 {strides = array<i32>} : memref<1x1x128xf32, #tpu.memory_space<vmem>>, vector<1x1x128xf32>,
    return
  }
  func.func @transform_0(%arg0: i32) -> (i32, i32) {
    %c0_i32 = arith.constant 0 : i32
    %c0_i32_0 = arith.constant 0 : i32
    return %c0_i32, %arg0 : i32, i32
  }
  func.func @transform_1(%arg0: i32) -> (i32, i32) {
    %c0_i32 = arith.constant 0 : i32
    %c0_i32_0 = arith.constant 0 : i32
    return %c0_i32, %arg0 : i32, i32
  }
  func.func @transform_2(%arg0: i32) -> (i32, i32) {
    %c0_i32 = arith.constant 0 : i32
    %c0_i32_0 = arith.constant 0 : i32
    %c0_i32_1 = arith.constant 0 : i32
    return %c0_i32, %c0_i32_0 : i32, i32
  }
  func.func @transform_3(%arg0: i32) -> (i32, i32, i32) {
    %c0_i32 = arith.constant 0 : i32
    %c0_i32_0 = arith.constant 0 : i32
    %c0_i32_1 = arith.constant 0 : i32
    return %arg0, %c0_i32, %c0_i32_0 : i32, i32, i32
  }
}

</mosaic_0001>

<bundles_post_ra>
// kernel: tpu_custom_call.1
= control target key start
LH: loop header
LB: loop body
LE: loop exit
PB: predicated region body
PF: predicated region fallthrough
CT: control target
= control target key end

     0   :  { %v130_v1 = vmov 0   ;;  %s179_s0 = inlined_call_operand.vmem [shape: f32[2,128], index: 0, kind: input, shape index: {}]   ;;  %s180_s1 = inlined_call_operand.vmem [shape: s32[1,128], index: 1, kind: input, shape index: {}]   ;;  %s181_s2 = inlined_call_operand.vmem [shape: f32[2,1], index: 2, kind: input, shape index: {}]   ;;  %s182_s3 = inlined_call_operand.hbm [shape: f32[1,1,128], index: 3, kind: output, shape index: {}]  }
   0x1   :  { %v17_v0 = vld [vmem:[%s181_s2] sm:$0x3]  ;;  %99 = vset.pattern.permute.xlu0 %v130_v1 }
   0x2   :  { %8 = vsyncpa [#allocation3], 0  ;;  %58 = vperm.xlu0 %99, %v17_v0   ;;  %vm18_vm0 = vcmask 1041408   ;;  %v15_v2 = vld [vmem:[%s179_s0] sm:$0x3]  ;;  %v38_v14 = vlaneseq }
   0x3   :  { %v19_v3 = vsel %vm18_vm0, %v15_v2, -inf  ;;  %v96_v18 = vld [vmem:[%s180_s1] ss:$0 sm:$0xff]  ;;  %s131_s1 = smov [#allocation2]  }
   0x4   :  { %v20_v4 = vrot.slane %v19_v3, 4  ;;  %v39_v16 = vshrl.u32 %v38_v14, 7  ;;  %v76_v47 = vand.u32 127, %v38_v14  ;;  %s88_s16 = sshll.u32 %s131_s1, 4  ;;  %s89_s16 = int_to_ptr.vmem [resolvable:$true] %s88_s16 }
   0x5   :  { %s106_s17 = scalar_lea.vmem %s89_s16, 16  ;;  %s110_s18 = scalar_lea.vmem %s89_s16, 32 }
   0x6   :  { %v21_v5 = vmax.f32 %v19_v3, %v20_v4  ;;  %vm44_vm1 = vcmp.eq.s32.totalorder %v39_v16, %v96_v18  ;;  %vm79_vm2 = vcmp.lt.s32.totalorder %v76_v47, 8  ;;  %p107_p0 = scmp.ne.s32.totalorder %s89_s16, %s106_s17  ;;  %p111_p1 = scmp.lt.s32.totalorder %s89_s16, %s89_s16 }
   0x7   :  { %p112_p2 = scmp.lt.s32.totalorder %s110_s18, %s106_s17 }
   0x8   :  { %v22_v6 = vrot.slane %v21_v5, 2 }
   0x9   :  { %p113_p3 = por %p112_p2, %p111_p1 }
   0xa   :  { %v23_v7 = vmax.f32 %v21_v5, %v22_v6 }
   0xb   :  { %p114_p4 = pnand %p113_p3, %p107_p0 }
   0xc   :  { %v24_v8 = vrot.slane %v23_v7, 1 }
   0xe   :  { %v25_v9 = vmax.f32 %v23_v7, %v24_v8 }
  0x10   :  { %v26_v10 = vsub.f32 %v15_v2, %v25_v9 }
  0x12   :  { %v27_v11 = vmul.f32 1.442695, %v26_v10  ;;  %v45_v20 = vsel %vm44_vm1, %v26_v10, 0.0 }
  0x13   :  { %v46_v22 = vsel %vm18_vm0, %v45_v20, 0.0 }
  0x14   :  { %100 = vpow2.f32 %v27_v11  ;;  %v47_v24 = vrot.slane %v46_v22, 4 }
  0x16   :  { %v48_v26 = vadd.f32 %v47_v24, %v46_v22 }
  0x18   :  { %v49_v27 = vrot.slane %v48_v26, 2 }
  0x1a   :  { %v50_v28 = vadd.f32 %v49_v27, %v48_v26 }
  0x1c   :  { %v51_v29 = vrot.slane %v50_v28, 1 }
  0x1e   :  { %v101_v12 = vpop.eup %100  ;;  %v52_v32 = vadd.f32 %v51_v29, %v50_v28 }
  0x1f   :  { %v29_v13 = vsel %vm18_vm0, %v101_v12, 0.0 }
  0x20   :  { %v30_v15 = vrot.slane %v29_v13, 4 }
  0x22   :  { %v31_v17 = vadd.f32 %v30_v15, %v29_v13 }
  0x24   :  { %v32_v19 = vrot.slane %v31_v17, 2 }
  0x26   :  { %v33_v21 = vadd.f32 %v32_v19, %v31_v17 }
  0x28   :  { %v34_v23 = vrot.slane %v33_v21, 1 }
  0x2a   :  { %v35_v25 = vadd.f32 %v34_v23, %v33_v21 }
  0x2c   :  { %102 = vlog2.f32 %v35_v25 }
  0x36   :  { %v103_v30 = vpop.eup %102 }
  0x37   :  { %v37_v31 = vmul.f32 0.6931472, %v103_v30 }
  0x39   :  { %v53_v33 = vsub.f32 %v52_v32, %v37_v31 }
  0x3b   :  { %v54_v34 = vmul.f32 1.442695, %v53_v33 }
  0x3d   :  { %104 = vpow2.f32 %v54_v34 }
  0x47   :  { %v105_v39 = vpop.eup %104 }
  0x48   :  { %v69_v42 = vsub.f32 1.0, %v105_v39 }
  0x4a   :  { %v70_v45 = vmul.f32 %v69_v42, %v69_v42 }
  0x81   :  { %v59_v35 = vpop.permute.xlu0 %58 }
  0x82   :  { %v61_v36 = vsel %vm44_vm1, %v59_v35, 0.0 }
  0x83   :  { %v62_v37 = vsel %vm18_vm0, %v61_v36, 0.0 }
  0x84   :  { %v63_v38 = vrot.slane %v62_v37, 4 }
  0x86   :  { %v64_v40 = vadd.f32 %v63_v38, %v62_v37 }
  0x88   :  { %v65_v41 = vrot.slane %v64_v40, 2 }
  0x8a   :  { %v66_v43 = vadd.f32 %v65_v41, %v64_v40 }
  0x8c   :  { %v67_v44 = vrot.slane %v66_v43, 1 }
  0x8e   :  { %v68_v46 = vadd.f32 %v67_v44, %v66_v43 }
  0x90   :  { %v71_v48 = vmul.f32 %v70_v45, %v68_v46 }
  0x92   :  { %v72_v49 = vsub.f32 0.0, %v71_v48 }
  0x94   :  { %v73_v50 = vmul.f32 %v72_v49, %v53_v33 }
  0x96   :  { %v80_v51 = vsel %vm79_vm2, %v73_v50, 0.0 }
  0x97   :  { %81 = vst [vmem:[#allocation2] sm:$0x1] %v80_v51 }
  0x98   :  { %117 = shalt.err (!%p114_p4)
}
  0x99   :  { %s118_s21 = scalar_lea.hbm %s182_s3, 16 }
  0x9a   :  { %p119_p5 = scmp.ne.s32.totalorder %s182_s3, %s118_s21  ;;  %p122_p6 = scmp.lt.u32.totalorder %s118_s21, %s182_s3 }
  0x9c   :  { %p124_p7 = pnand %p122_p6, %p119_p5 }
  0x9e   :  { %127 = shalt.err (!%p124_p7)
}
  0x9f   :  { %91 = dma.vmem_to_hbm [thread:$0]  %s89_s16, 16, %s182_s3, [#allocation3]  }
  0xa0   :  { %128 = dma.done.wait [#allocation3], 16  }
  0xa1   :  { %129 = vsyncadd [#allocation3], 4294967280 }
  0xa2   :  { %95 = vsyncpa [#allocation3], 1 }

</bundles_post_ra>
